<compile_context>
chip_gen: v6e
topology: v6e:2x2x1
jax: 0.10.0
libtpu: 0.0.40
codegen_flags: <defaults>
</compile_context>

<pallas_src>
import functools

import jax
import jax.numpy as jnp
from jax import lax
from jax.experimental import pallas as pl
from jax.experimental.pallas import tpu as pltpu


def _round_up(n: int, m: int) -> int:
    return ((n + m - 1) // m) * m


def _patch_merging_kernel(x_ref, mult_ref, w_ref, bias_ref, o_ref, *,
                          inv_k, eps, mxu_dtype):
    # x_ref:    (tm, K_pad)     unique-slice tokens (K = 6C, zero-padded cols)
    # mult_ref: (1,  K_pad)     per-channel multiplicity (1/2), 0 on padded cols
    # w_ref:    (K_pad, N_pad)  gamma-folded, dedup-summed W^T (zero-padded)
    # bias_ref: (1,  N_pad)     beta @ W^T (zero-padded)
    # o_ref:    (tm, N_pad)
    x = x_ref[...].astype(jnp.float32)
    mult = mult_ref[...]

    # Single-pass moments over the *8C multiset* using the multiplicity vector
    # (it is also the padding mask, so padded columns contribute nothing).
    xm = x * mult
    mean = jnp.sum(xm, axis=-1, keepdims=True) * jnp.float32(inv_k)
    sumsq = jnp.sum(xm * x, axis=-1, keepdims=True) * jnp.float32(inv_k)
    var = sumsq - mean * mean
    xn = (x - mean) * lax.rsqrt(var + jnp.float32(eps))

    # gamma is already folded into w_ref; beta @ W^T is the bias row.
    y = jnp.dot(xn.astype(mxu_dtype), w_ref[...],
                preferred_element_type=jnp.float32)
    o_ref[...] = (y + bias_ref[...]).astype(o_ref.dtype)


def patch_merging_pallas(x, gamma, beta, weight, *, eps=1e-5, tm=None,
                         use_bf16_mxu=False):
    """x: [B, D, H, W, C]; gamma/beta: [8C]; weight: [2C, 8C] (PyTorch Linear)."""
    B, D, H, W, C = x.shape
    k_full = 8 * C
    n = weight.shape[0]
    assert weight.shape == (n, k_full), "weight must be [2C, 8C] (nn.Linear layout)"

    # 1) pad odd spatial dims (matches F.pad in the PyTorch forward)
    if (D % 2) or (H % 2) or (W % 2):
        x = jnp.pad(x, ((0, 0), (0, D % 2), (0, H % 2), (0, W % 2), (0, 0)))
    D2, H2, W2 = x.shape[1] // 2, x.shape[2] // 2, x.shape[3] // 2

    # 2) gather only the 6 UNIQUE 2x2x2 slices (the module's x5==x2 and x6==x3
    #    duplicates are folded into the multiplicity vector and W_eff below).
    x0 = x[:, 0::2, 0::2, 0::2, :]
    x1 = x[:, 1::2, 0::2, 0::2, :]
    x2 = x[:, 0::2, 1::2, 0::2, :]   # appears twice in the reference concat
    x3 = x[:, 0::2, 0::2, 1::2, :]   # appears twice in the reference concat
    x4 = x[:, 1::2, 0::2, 1::2, :]
    x7 = x[:, 1::2, 1::2, 1::2, :]
    xc = jnp.concatenate([x0, x1, x2, x3, x4, x7], axis=-1)   # [B,D2,H2,W2,6C]

    m = B * D2 * H2 * W2
    k_u = 6 * C
    x2d = xc.reshape(m, k_u)

    # Lane-dense feature padding (multiples of 128).
    k_pad = _round_up(k_u, 128)
    n_pad = _round_up(n, 128)

    # Row tile: large (<=1024), sublane-aligned (16 for sub-f32 dtypes), and
    # >= 2 grid steps when M is big enough (v7x has two TensorCores).  For
    # small M use a single full-extent block (block dim == array dim).
    row_align = 8 if jnp.dtype(x.dtype).itemsize >= 4 else 16
    if tm is None:
        if m >= 2048:
            tm = 1024
        elif m > 256:
            tm = _round_up((m + 1) // 2, row_align)
        else:
            tm = m

    if k_pad != k_u:
        x2d = jnp.pad(x2d, ((0, 0), (0, k_pad - k_u)))

    # Multiplicity of each unique channel in the original 8C concat:
    #   [x0, x1] -> 1, [x2, x3] -> 2 (x5/x6 duplicates), [x4, x7] -> 1.
    # Zero on padded columns => doubles as the LN padding mask.
    mult = jnp.concatenate([
        jnp.ones((2 * C,), jnp.float32),
        jnp.full((2 * C,), 2.0, jnp.float32),
        jnp.ones((2 * C,), jnp.float32),
    ]).reshape(1, k_u)
    mult = jnp.pad(mult, ((0, 0), (0, k_pad - k_u)))

    # Offline weight prep (tiny one-time ops; prepare once outside in prod):
    #   W^T [8C,2C] -> gamma-scaled -> duplicated rows summed into unique rows.
    w_t = jnp.transpose(weight).astype(jnp.float32)            # [8C, 2C]
    wg = gamma.astype(jnp.float32)[:, None] * w_t
    w_eff = jnp.concatenate([
        wg[0 * C:2 * C],                                       # x0, x1
        wg[2 * C:3 * C] + wg[5 * C:6 * C],                     # x2 (+ x5 dup)
        wg[3 * C:4 * C] + wg[6 * C:7 * C],                     # x3 (+ x6 dup)
        wg[4 * C:5 * C],                                       # x4
        wg[7 * C:8 * C],                                       # x7
    ], axis=0)                                                 # [6C, 2C]
    bias = (beta.astype(jnp.float32) @ w_t).reshape(1, n)      # [1, 2C]

    mxu_dtype = jnp.bfloat16 if use_bf16_mxu else jnp.float32
    w_eff = jnp.pad(w_eff, ((0, k_pad - k_u), (0, n_pad - n))).astype(mxu_dtype)
    bias = jnp.pad(bias, ((0, 0), (0, n_pad - n)))

    grid = (pl.cdiv(m, tm),)
    kernel = functools.partial(_patch_merging_kernel,
                               inv_k=1.0 / float(k_full), eps=float(eps),
                               mxu_dtype=mxu_dtype)

    in_bytes = jnp.dtype(x2d.dtype).itemsize
    out_bytes = jnp.dtype(x.dtype).itemsize
    w_bytes = jnp.dtype(mxu_dtype).itemsize

    # VMEM budget: double-buffered x tile + f32 temporaries (x, x*mult, xn)
    # + double-buffered out tile + f32 accumulator + resident weight/mult/bias.
    vmem_bytes = (2 * tm * k_pad * in_bytes
                  + 3 * tm * k_pad * 4
                  + 2 * tm * n_pad * out_bytes
                  + tm * n_pad * 4
                  + 2 * k_pad * n_pad * w_bytes
                  + 2 * (k_pad + n_pad) * 4)
    vmem_limit = int(min(max(vmem_bytes + (4 << 20), 16 << 20), 48 << 20))

    cost = pl.CostEstimate(
        flops=2 * m * k_pad * n_pad + 6 * m * k_pad,
        transcendentals=m,  # one rsqrt per row
        bytes_accessed=(m * k_pad * in_bytes + m * n_pad * out_bytes
                        + k_pad * n_pad * w_bytes + (k_pad + n_pad) * 4),
    )

    out = pl.pallas_call(
        kernel,
        out_shape=jax.ShapeDtypeStruct((m, n_pad), x.dtype),
        grid_spec=pltpu.PrefetchScalarGridSpec(
            num_scalar_prefetch=0,
            grid=grid,
            in_specs=[
                pl.BlockSpec((tm, k_pad), lambda i: (i, 0)),     # token rows
                pl.BlockSpec((1, k_pad), lambda i: (0, 0)),      # multiplicity
                pl.BlockSpec((k_pad, n_pad), lambda i: (0, 0)),  # W_eff (resident)
                pl.BlockSpec((1, n_pad), lambda i: (0, 0)),      # bias  (resident)
            ],
            out_specs=pl.BlockSpec((tm, n_pad), lambda i: (i, 0)),
        ),
        compiler_params=pltpu.CompilerParams(
            dimension_semantics=("parallel",),
            vmem_limit_bytes=vmem_limit,
            allow_input_fusion=[True, False, False, False],
        ),
        cost_estimate=cost,
    )(x2d, mult, w_eff, bias)

    if n_pad != n:
        out = out[:, :n]
    return out.reshape(B, D2, H2, W2, n)


def patch_merging_reference(x, gamma, beta, weight, eps=1e-5):
    """Pure-JAX reference matching the PyTorch module exactly (8-slice path)."""
    B, D, H, W, C = x.shape
    if (D % 2) or (H % 2) or (W % 2):
        x = jnp.pad(x, ((0, 0), (0, D % 2), (0, H % 2), (0, W % 2), (0, 0)))
    x0 = x[:, 0::2, 0::2, 0::2, :]
    x1 = x[:, 1::2, 0::2, 0::2, :]
    x2 = x[:, 0::2, 1::2, 0::2, :]
    x3 = x[:, 0::2, 0::2, 1::2, :]
    x4 = x[:, 1::2, 0::2, 1::2, :]
    x5 = x[:, 0::2, 1::2, 0::2, :]
    x6 = x[:, 0::2, 0::2, 1::2, :]
    x7 = x[:, 1::2, 1::2, 1::2, :]
    xc = jnp.concatenate([x0, x1, x2, x3, x4, x5, x6, x7], axis=-1)
    mean = jnp.mean(xc, axis=-1, keepdims=True)
    var = jnp.mean((xc - mean) ** 2, axis=-1, keepdims=True)
    xn = (xc - mean) / jnp.sqrt(var + eps) * gamma + beta
    return jnp.einsum("...k,nk->...n", xn, weight)


if __name__ == "__main__":
    key = jax.random.PRNGKey(0)
    kx, kg, kb, kw = jax.random.split(key, 4)

    B, D, H, W, C = 2, 4, 4, 4, 4          # small 3D volume, in_channels=4
    x = jax.random.normal(kx, (B, D, H, W, C), jnp.float32)
    gamma = 1.0 + 0.1 * jax.random.normal(kg, (8 * C,), jnp.float32)
    beta = 0.1 * jax.random.normal(kb, (8 * C,), jnp.float32)
    bound = 1.0 / float(8 * C) ** 0.5       # PyTorch nn.Linear default init range
    weight = jax.random.uniform(kw, (2 * C, 8 * C), jnp.float32, -bound, bound)

    y = jax.block_until_ready(patch_merging_pallas(x, gamma, beta, weight))
    y_ref = patch_merging_reference(x, gamma, beta, weight)
    assert y.shape == (B, D // 2, H // 2, W // 2, 2 * C), y.shape
    assert jnp.allclose(y, y_ref, atol=1e-4, rtol=1e-4), \
        float(jnp.max(jnp.abs(y - y_ref)))

    # Odd spatial dims exercise the F.pad branch of the forward.
    x_odd = jax.random.normal(kx, (2, 3, 4, 4, C), jnp.float32)
    y2 = jax.block_until_ready(patch_merging_pallas(x_odd, gamma, beta, weight))
    y2_ref = patch_merging_reference(x_odd, gamma, beta, weight)
    assert y2.shape == (2, 2, 2, 2, 2 * C), y2.shape
    assert jnp.allclose(y2, y2_ref, atol=1e-4, rtol=1e-4), \
        float(jnp.max(jnp.abs(y2 - y2_ref)))

    print("KERNEL_OK")
</pallas_src>

<mosaic_0001>
module attributes {stable_mosaic.version = 11 : i64} {
  func.func @_patch_merging_kernel(%arg0: i32, %arg1: memref<16x128xf32, #tpu.memory_space<vmem>>, %arg2: memref<1x128xf32, #tpu.memory_space<vmem>>, %arg3: memref<128x128xf32, #tpu.memory_space<vmem>>, %arg4: memref<1x128xf32, #tpu.memory_space<vmem>>, %arg5: memref<16x128xf32, #tpu.memory_space<vmem>>) attributes {dimension_semantics = [#tpu.dimension_semantics<parallel>], iteration_bounds = array<i64: 1>, scalar_prefetch = 0 : i64, scratch_operands = 0 : i64, tpu.core_type = #tpu.core_type<tc>, window_params = [{transform_indices = @transform_0, window_bounds = array<i64: 16, 128>}, {pipeline_mode = #tpu.pipeline_mode<synchronous>, transform_indices = @transform_1, window_bounds = array<i64: 1, 128>}, {pipeline_mode = #tpu.pipeline_mode<synchronous>, transform_indices = @transform_2, window_bounds = array<i64: 128, 128>}, {pipeline_mode = #tpu.pipeline_mode<synchronous>, transform_indices = @transform_3, window_bounds = array<i64: 1, 128>}, {transform_indices = @transform_4, window_bounds = array<i64: 16, 128>}]} {
    %c0 = arith.constant 0 : index
    %c0_0 = arith.constant 0 : index
    %0 = vector.load %arg1[%c0, %c0_0] : memref<16x128xf32, #tpu.memory_space<vmem>>, vector<16x128xf32>
    %c0_1 = arith.constant 0 : index
    %c0_2 = arith.constant 0 : index
    %1 = vector.load %arg2[%c0_1, %c0_2] : memref<1x128xf32, #tpu.memory_space<vmem>>, vector<1x128xf32>
    %2 = vector.broadcast %1 : vector<1x128xf32> to vector<16x128xf32>
    %3 = arith.mulf %0, %2 : vector<16x128xf32>
    %cst = arith.constant dense<0.000000e+00> : vector<16xf32>
    %4 = vector.multi_reduction <add>, %3, %cst [1] : vector<16x128xf32> to vector<16xf32>
    %5 = vector.shape_cast %4 : vector<16xf32> to vector<16x1xf32>
    %cst_3 = arith.constant 3.125000e-02 : f32
    %6 = vector.broadcast %cst_3 : f32 to vector<16x1xf32>
    %7 = arith.mulf %5, %6 : vector<16x1xf32>
    %8 = arith.mulf %3, %0 : vector<16x128xf32>
    %cst_4 = arith.constant dense<0.000000e+00> : vector<16xf32>
    %9 = vector.multi_reduction <add>, %8, %cst_4 [1] : vector<16x128xf32> to vector<16xf32>
    %10 = vector.shape_cast %9 : vector<16xf32> to vector<16x1xf32>
    %cst_5 = arith.constant 3.125000e-02 : f32
    %11 = vector.broadcast %cst_5 : f32 to vector<16x1xf32>
    %12 = arith.mulf %10, %11 : vector<16x1xf32>
    %13 = arith.mulf %7, %7 : vector<16x1xf32>
    %14 = arith.subf %12, %13 : vector<16x1xf32>
    %15 = vector.broadcast %7 : vector<16x1xf32> to vector<16x128xf32>
    %16 = arith.subf %0, %15 : vector<16x128xf32>
    %cst_6 = arith.constant 9.99999974E-6 : f32
    %17 = vector.broadcast %cst_6 : f32 to vector<16x1xf32>
    %18 = arith.addf %14, %17 : vector<16x1xf32>
    %19 = math.rsqrt %18 : vector<16x1xf32>
    %20 = vector.broadcast %19 : vector<16x1xf32> to vector<16x128xf32>
    %21 = arith.mulf %16, %20 : vector<16x128xf32>
    %c0_7 = arith.constant 0 : index
    %c0_8 = arith.constant 0 : index
    %22 = vector.load %arg3[%c0_7, %c0_8] : memref<128x128xf32, #tpu.memory_space<vmem>>, vector<128x128xf32>
    %cst_9 = arith.constant dense<0.000000e+00> : vector<16x128xf32>
    %23 = tpu.matmul %21, %22, %cst_9 {dimension_numbers = #tpu.dot_dimension_numbers<[1], [0], [0], [1], [0, 0, 1, 1], [], []>} : vector<16x128xf32>, vector<128x128xf32>, vector<16x128xf32> -> vector<16x128xf32>
    %c0_10 = arith.constant 0 : index
    %c0_11 = arith.constant 0 : index
    %24 = vector.load %arg4[%c0_10, %c0_11] : memref<1x128xf32, #tpu.memory_space<vmem>>, vector<1x128xf32>
    %25 = vector.broadcast %24 : vector<1x128xf32> to vector<16x128xf32>
    %26 = arith.addf %23, %25 : vector<16x128xf32>
    %c0_12 = arith.constant 0 : index
    %c0_13 = arith.constant 0 : index
    %27 = vector.load %arg5[%c0_12, %c0_13] : memref<16x128xf32, #tpu.memory_space<vmem>>, vector<16x128xf32>
    tpu.vector_store %arg5[%c0_12, %c0_13], %26 {strides = array<i32>} : memref<16x128xf32, #tpu.memory_space<vmem>>, vector<16x128xf32>,
    return
  }
  func.func @transform_0(%arg0: i32) -> (i32, i32) {
    %c0_i32 = arith.constant 0 : i32
    %c0_i32_0 = arith.constant 0 : i32
    return %arg0, %c0_i32 : i32, i32
  }
  func.func @transform_1(%arg0: i32) -> (i32, i32) {
    %c0_i32 = arith.constant 0 : i32
    %c0_i32_0 = arith.constant 0 : i32
    %c0_i32_1 = arith.constant 0 : i32
    return %c0_i32, %c0_i32_0 : i32, i32
  }
  func.func @transform_2(%arg0: i32) -> (i32, i32) {
    %c0_i32 = arith.constant 0 : i32
    %c0_i32_0 = arith.constant 0 : i32
    %c0_i32_1 = arith.constant 0 : i32
    return %c0_i32, %c0_i32_0 : i32, i32
  }
  func.func @transform_3(%arg0: i32) -> (i32, i32) {
    %c0_i32 = arith.constant 0 : i32
    %c0_i32_0 = arith.constant 0 : i32
    %c0_i32_1 = arith.constant 0 : i32
    return %c0_i32, %c0_i32_0 : i32, i32
  }
  func.func @transform_4(%arg0: i32) -> (i32, i32) {
    %c0_i32 = arith.constant 0 : i32
    %c0_i32_0 = arith.constant 0 : i32
    return %arg0, %c0_i32 : i32, i32
  }
}

</mosaic_0001>

<bundles_post_ra>
// kernel: tpu_custom_call.1
= control target key start
LH: loop header
LB: loop body
LE: loop exit
PB: predicated region body
PF: predicated region fallthrough
CT: control target
= control target key end

     0   :  { %9 = vsyncpa [#allocation3], 0  ;;  %s395_s0 = inlined_call_operand.hbm [shape: f32[16,128], index: 0, kind: input, shape index: {}]   ;;  %s396_s1 = inlined_call_operand.vmem [shape: f32[1,128], index: 1, kind: input, shape index: {}]   ;;  %s397_s2 = inlined_call_operand.hbm [shape: f32[128,128], index: 2, kind: input, shape index: {}]   ;;  %s398_s3 = inlined_call_operand.vmem [shape: f32[1,128], index: 3, kind: input, shape index: {}]   ;;  %s399_s4 = inlined_call_operand.hbm [shape: f32[16,128], index: 4, kind: output, shape index: {}]  }
   0x1   :  { %10 = vsyncpa [#allocation6], 0 }
   0x2   :  { %11 = vsyncpa [#allocation4], 0  ;;  %s331_s15 = smov [#allocation2]  }
   0x3   :  { %s17_s16 = sshll.u32 %s331_s15, 4  ;;  %s18_s16 = int_to_ptr.vmem [resolvable:$true] %s17_s16 }
   0x4   :  { %s273_s17 = scalar_lea.vmem %s18_s16, 256  ;;  %p278_p1 = scmp.lt.s32.totalorder %s18_s16, %s18_s16 }
   0x5   :  { %p274_p0 = scmp.ne.s32.totalorder %s18_s16, %s273_s17  ;;  %p279_p2 = scmp.lt.s32.totalorder %s273_s17, %s273_s17 }
   0x7   :  { %p280_p3 = por %p279_p2, %p278_p1 }
   0x9   :  { %p281_p4 = pnand %p280_p3, %p274_p0 }
   0xb   :  { %284 = shalt.err (!%p281_p4)
}
   0xc   :  { %s332_s18 = smov 128   ;;  %s333_s19 = smov 8  }
   0xd   :  { %23 = dma.hbm_to_vmem [thread:$0]  %s395_s0, 256, %s18_s16, [#allocation3], %s332_s18, %s332_s18, %s333_s19  }
   0xe   :  { %s334_s22 = smov [#allocation5]  }
   0xf   :  { %s31_s23 = sshll.u32 %s334_s22, 4  ;;  %s32_s23 = int_to_ptr.vmem [resolvable:$true] %s31_s23 }
  0x10   :  { %s293_s24 = scalar_lea.vmem %s32_s23, 2048  ;;  %p298_p6 = scmp.lt.s32.totalorder %s32_s23, %s32_s23 }
  0x11   :  { %p294_p5 = scmp.ne.s32.totalorder %s32_s23, %s293_s24  ;;  %p299_p7 = scmp.lt.s32.totalorder %s293_s24, %s293_s24 }
  0x13   :  { %p300_p8 = por %p299_p7, %p298_p6 }
  0x15   :  { %p301_p9 = pnand %p300_p8, %p294_p5 }
  0x17   :  { %304 = shalt.err (!%p301_p9)
}
  0x18   :  { %37 = dma.hbm_to_vmem [thread:$0]  %s397_s2, 2048, %s32_s23, [#allocation6], %s332_s18, %s332_s18, %s333_s19  }
  0x19   :  { %325 = dma.done.wait [#allocation3], 256  }
  0x1a   :  { %326 = vsyncadd [#allocation3], 4294967040 }
  0x1b   :  { %327 = dma.done.wait [#allocation6], 2048  }
  0x1c   :  { %328 = vsyncadd [#allocation6], 4294965248  ;;  %v373_v0 = vld [vmem:[#allocation2] sm:$0xff]  ;;  %v378_v2 = vld [vmem:[#allocation2 + $0x8] sm:$0xff]  ;;  %s335_s28 = smov [#allocation7]  }
  0x1d   :  { %v201_v1 = vld [vmem:[%s396_s1] ss:$0 sm:$0xff]  ;;  %v98_v5 = vld [vmem:[#allocation5 + $0x78] sm:$0xff]  ;;  %v96_v9 = vld [vmem:[#allocation5 + $0x68] sm:$0xff]  ;;  %s188_s29 = sshll.u32 %s335_s28, 4  ;;  %s189_s29 = int_to_ptr.vmem [resolvable:$true] %s188_s29 }
  0x1e   :  { %v55_v3 = vmul.f32 %v201_v1, %v373_v0  ;;  %v56_v4 = vmul.f32 %v201_v1, %v378_v2  ;;  %v97_v6 = vld [vmem:[#allocation5 + $0x70] sm:$0xff]  ;;  %221 = vmatprep.subr.mxu0 %v98_v5  ;;  %v95_v10 = vld [vmem:[#allocation5 + $0x60] sm:$0xff]  ;;  %v94_v11 = vld [vmem:[#allocation5 + $0x58] sm:$0xff]  ;;  %s305_s30 = scalar_lea.vmem %s189_s29, 256  ;;  %p310_p11 = scmp.lt.s32.totalorder %s189_s29, %s189_s29 }
  0x1f   :  { %222 = vmatpush3.msra.mxu0 %v98_v5  ;;  %v93_v12 = vld [vmem:[#allocation5 + $0x50] sm:$0xff]  ;;  %v92_v13 = vld [vmem:[#allocation5 + $0x48] sm:$0xff]  ;;  %v91_v14 = vld [vmem:[#allocation5 + $0x40] sm:$0xff]  ;;  %p306_p10 = scmp.ne.s32.totalorder %s189_s29, %s305_s30  ;;  %p311_p12 = scmp.lt.s32.totalorder %s305_s30, %s305_s30 }
  0x20   :  { %57 = vadd.xlane.f32.xlu0 %v55_v3  ;;  %v63_v7 = vmul.f32 %v55_v3, %v373_v0  ;;  %223 = vmatprep.subr.mxu0 %v97_v6  ;;  %v64_v8 = vmul.f32 %v56_v4, %v378_v2  ;;  %v90_v15 = vld [vmem:[#allocation5 + $0x38] sm:$0xff]  ;;  %v89_v16 = vld [vmem:[#allocation5 + $0x30] sm:$0xff]  ;;  %v88_v17 = vld [vmem:[#allocation5 + $0x28] sm:$0xff] }
  0x21   :  { %224 = vmatpush3.msra.mxu0 %v97_v6  ;;  %v87_v18 = vld [vmem:[#allocation5 + $0x20] sm:$0xff]  ;;  %v86_v19 = vld [vmem:[#allocation5 + $0x18] sm:$0xff]  ;;  %v85_v20 = vld [vmem:[#allocation5 + $0x10] sm:$0xff]  ;;  %p312_p13 = por %p311_p12, %p310_p11 }
  0x22   :  { %65 = vadd.xlane.f32.xlu1 %v63_v7  ;;  %225 = vmatprep.subr.mxu0 %v96_v9  ;;  %v84_v21 = vld [vmem:[#allocation5 + $0x8] sm:$0xff]  ;;  %v83_v22 = vld [vmem:[#allocation5] sm:$0xff]  ;;  %v202_v43 = vld [vmem:[%s398_s3] ss:$0 sm:$0xff] }
  0x23   :  { %226 = vmatpush3.msra.mxu0 %v96_v9  ;;  %p313_p0 = pnand %p312_p13, %p306_p10 }
  0x24   :  { %59 = vadd.xlane.f32.xlu0 %v56_v4  ;;  %227 = vmatprep.subr.mxu0 %v95_v10 }
  0x25   :  { %228 = vmatpush3.msra.mxu0 %v95_v10 }
  0x26   :  { %67 = vadd.xlane.f32.xlu1 %v64_v8  ;;  %229 = vmatprep.subr.mxu0 %v94_v11 }
  0x27   :  { %230 = vmatpush3.msra.mxu0 %v94_v11 }
  0x28   :  { %231 = vmatprep.subr.mxu0 %v93_v12 }
  0x29   :  { %232 = vmatpush3.msra.mxu0 %v93_v12 }
  0x2a   :  { %233 = vmatprep.subr.mxu0 %v92_v13 }
  0x2b   :  { %234 = vmatpush3.msra.mxu0 %v92_v13 }
  0x2c   :  { %235 = vmatprep.subr.mxu0 %v91_v14 }
  0x2d   :  { %236 = vmatpush3.msra.mxu0 %v91_v14 }
  0x2e   :  { %237 = vmatprep.subr.mxu0 %v90_v15 }
  0x2f   :  { %238 = vmatpush3.msra.mxu0 %v90_v15 }
  0x30   :  { %239 = vmatprep.subr.mxu0 %v89_v16 }
  0x31   :  { %240 = vmatpush3.msra.mxu0 %v89_v16 }
  0x32   :  { %241 = vmatprep.subr.mxu0 %v88_v17 }
  0x33   :  { %242 = vmatpush3.msra.mxu0 %v88_v17 }
  0x34   :  { %243 = vmatprep.subr.mxu0 %v87_v18 }
  0x35   :  { %244 = vmatpush3.msra.mxu0 %v87_v18 }
  0x36   :  { %245 = vmatprep.subr.mxu0 %v86_v19 }
  0x37   :  { %246 = vmatpush3.msra.mxu0 %v86_v19 }
  0x38   :  { %247 = vmatprep.subr.mxu0 %v85_v20 }
  0x39   :  { %248 = vmatpush3.msra.mxu0 %v85_v20 }
  0x3a   :  { %249 = vmatprep.subr.mxu0 %v84_v21 }
  0x3b   :  { %250 = vmatpush3.msra.mxu0 %v84_v21 }
  0x3c   :  { %251 = vmatprep.subr.mxu0 %v83_v22 }
  0x3d   :  { %252 = vmatpush3.msra.mxu0 %v83_v22 }
  0xa9   :  { %v58_v23 = vpop.xlane.xlu0 %57 }
  0xaa   :  { %v61_v24 = vmul.f32 0.03125, %v58_v23 }
  0xab   :  { %v66_v25 = vpop.xlane.xlu1 %65 }
  0xac   :  { %v71_v26 = vmul.f32 %v61_v24, %v61_v24  ;;  %v69_v27 = vmul.f32 0.03125, %v66_v25  ;;  %v75_v37 = vsub.f32 %v373_v0, %v61_v24 }
  0xad   :  { %v60_v28 = vpop.xlane.xlu0 %59 }
  0xae   :  { %v73_v29 = vsub.f32 %v69_v27, %v71_v26  ;;  %v62_v30 = vmul.f32 0.03125, %v60_v28 }
  0xaf   :  { %v68_v31 = vpop.xlane.xlu1 %67 }
  0xb0   :  { %v77_v32 = vadd.f32 1e-05, %v73_v29  ;;  %v72_v33 = vmul.f32 %v62_v30, %v62_v30  ;;  %v70_v34 = vmul.f32 0.03125, %v68_v31  ;;  %v76_v40 = vsub.f32 %v378_v2, %v62_v30 }
  0xb2   :  { %261 = vrsqrt.f32 %v77_v32  ;;  %v74_v35 = vsub.f32 %v70_v34, %v72_v33 }
  0xb4   :  { %v78_v36 = vadd.f32 1e-05, %v74_v35 }
  0xb6   :  { %263 = vrsqrt.f32 %v78_v36 }
  0xbf   :  { %v262_v38 = vpop.eup %261 }
  0xc0   :  { %v81_v39 = vmul.f32 %v262_v38, %v75_v37 }
  0xc2   :  { %253 = vmatprep.mubr.f32.mxu0 %v81_v39 }
  0xc3   :  { %v264_v41 = vpop.eup %263 }
  0xc4   :  { %v82_v42 = vmul.f32 %v264_v41, %v76_v40 }
  0xc6   :  { %254 = vmatmul.mubr.f32.vlgmr.msra.gmra.mxu0 %v82_v42 }
 0x186   :  { %v255_v44 = vpop.f32.mrf.mxu0 }
 0x187   :  { %v178_v45 = vadd.f32 %v255_v44, %v202_v43 }
 0x188   :  { %v172_v46 = vpop.f32.mrf.mxu0 }
 0x189   :  { %182 = vst [vmem:[#allocation7 + $0x8] sm:$0xff] %v178_v45  ;;  %v173_v47 = vadd.f32 %v202_v43, %v172_v46 }
 0x18b   :  { %181 = vst [vmem:[#allocation7] sm:$0xff] %v173_v47 }
 0x18c   :  { %316 = shalt.err (!%p313_p0)
}
 0x18d   :  { %194 = dma.vmem_to_hbm [thread:$0]  %s189_s29, 256, %s399_s4, [#allocation4], %s332_s18, %s332_s18, %s333_s19  }
 0x18e   :  { %329 = dma.done.wait [#allocation4], 256  }
 0x18f   :  { %330 = vsyncadd [#allocation4], 4294967040 }
 0x190   :  { %198 = vsyncpa [#allocation3], 1 }
 0x191   :  { %199 = vsyncpa [#allocation6], 1 }
 0x192   :  { %200 = vsyncpa [#allocation4], 1 }

</bundles_post_ra>
